<compile_context>
chip_gen: v7x
topology: tpu7x:2x2x1
jax: 0.10.0
libtpu: 0.0.40
codegen_flags: <defaults>
</compile_context>

<pallas_src>
import functools

import numpy as np

import jax
import jax.numpy as jnp
from jax.experimental import pallas as pl
from jax.experimental.pallas import tpu as pltpu


def _dwsep_kernel(x_ref, wf_ref, bf_ref, m_ref, o_ref, *,
                  offs, needs_mask, nb, mxu_dtype):
    """Fused depthwise-separable conv for one batch block.

    x_ref : (NB, C, HWp)   flattened, lane-dense input images
    wf_ref: (O, 9*C)       fused (depthwise-tap x pointwise) weights
    bf_ref: (O, 1)         fused bias (pb + pw @ db)
    m_ref : (9, HWp)       per-tap validity masks (1.0 in-image, 0.0 padding)
    o_ref : (NB, O, HWp)   lane-dense output block
    """
    # Weight / bias / mask loads hoisted out of the per-image loop
    # (loaded once per grid step).
    w_big = wf_ref[...].astype(mxu_dtype)              # (O, 9C)  MXU operand
    bias = bf_ref[...].astype(jnp.float32)             # (O, 1)   f32
    masks = m_ref[...] > 0.5                           # (9, HWp) bool
    tap_mask = [masks[t:t + 1, :] for t in range(len(offs))]

    def one_image(b, carry):
        x = x_ref[b]                                   # (C, HWp), input dtype
        parts = []
        for t, off in enumerate(offs):                 # static 9-tap unroll
            # x_t[c, p] == x[c, p + off] wherever tap t stays inside the image.
            x_t = x if off == 0 else jnp.roll(x, -off, axis=-1)
            if needs_mask[t]:
                # jnp.where (not multiply): wrapped inf/NaN cannot leak into
                # positions that true zero-padding would have made zero.
                x_t = jnp.where(tap_mask[t], x_t, jnp.zeros_like(x_t))
            parts.append(x_t)
        # One MXU matmul with K = 9*C instead of nine K=C matmuls: densifies
        # the sublane-padded C-row operands and cuts MXU push/pop traffic 9x.
        x_stack = jnp.concatenate(parts, axis=0).astype(mxu_dtype)  # (9C, HWp)
        acc = jnp.dot(w_big, x_stack, preferred_element_type=jnp.float32)
        o_ref[b] = (acc + bias).astype(o_ref.dtype)
        return carry

    if nb == 1:
        one_image(0, 0)
    else:
        # fori_loop (vs static Python unroll) bounds the live set so larger
        # batch blocks don't spill vregs; a small unroll keeps LLO scheduling
        # effective.
        jax.lax.fori_loop(0, nb, one_image, 0, unroll=min(nb, 4))


def _tpu_vmem_capacity_bytes():
    """Physical per-core VMEM; conservative (v7x-sized) fallback on failure."""
    try:
        info = pltpu.get_tpu_info()
        for attr in ("vmem_capacity_bytes", "vmem_bytes"):
            val = getattr(info, attr, None)
            if val:
                return int(val)
    except Exception:
        pass
    return 64 << 20


def _pick_batch_block(n, bytes_per_image, budget_bytes):
    """Largest batch block within budget, preferring an even (>=2) number of
    grid steps so v7x's two TensorCores both stay busy and the input/output
    pipeline can double-buffer."""
    divisors = [d for d in range(1, n + 1) if n % d == 0]
    fitting = [d for d in divisors if d * bytes_per_image <= budget_bytes]
    if not fitting:
        # TODO(synk): add an H-strip grid axis (1-row halo, strip width a
        # multiple of 128 lanes) for images whose per-image block alone
        # exceeds the VMEM budget (mainly v7x's 64 MiB).
        return 1

    def pref(d):
        steps = n // d
        return (steps >= 2 and steps % 2 == 0, steps >= 2, d)

    return max(fitting, key=pref)


def depthwise_separable_conv(x_nchw, dw, db, pw, pb, *, mxu_dtype=jnp.bfloat16):
    """3x3 depthwise (stride 1, pad 1, groups=C) followed by 1x1 pointwise.

    x_nchw: (N, C, H, W); dw: (C,1,3,3); db: (C,); pw: (O,C,1,1); pb: (O,).
    mxu_dtype: dtype fed to the MXU (accumulation always f32). bf16 is native
               on every TPU generation's MXU; pass jnp.float32 for tighter
               numerics.
    """
    N, C, H, W = x_nchw.shape
    O = pw.shape[0]
    HW = H * W
    # Lane density: round the flattened spatial dim up to a multiple of 128 so
    # every load/store is a full-lane vector (HW=256 in the demo needs no pad).
    HWp = -(-HW // 128) * 128

    # ---- free layout change: flatten spatial (no transpose) ----------------
    x_flat = x_nchw.reshape(N, C, HW)
    if HWp != HW:
        x_flat = jnp.pad(x_flat, ((0, 0), (0, 0), (0, HWp - HW)))

    # ---- fold depthwise taps + bias into the pointwise weights (tiny) ------
    pw2 = pw[:, :, 0, 0].astype(jnp.float32)                        # (O, C)
    dw9 = jnp.transpose(dw[:, 0, :, :].astype(jnp.float32),
                        (1, 2, 0)).reshape(9, C)                    # (9, C)
    # W_big[o, t*C + c] = dw[c, tap t] * pw[o, c]
    w_big = jnp.transpose(dw9[:, None, :] * pw2[None, :, :],
                          (1, 0, 2)).reshape(O, 9 * C)              # (O, 9C)
    bf = (pb.astype(jnp.float32) + pw2 @ db.astype(jnp.float32)).reshape(O, 1)
    # TODO(synk): for large C*O the 9x MXU-FLOP inflation of tap folding can
    # saturate the MXU; add an unfused depthwise(VPU)+pointwise(MXU) path.

    # ---- per-tap shift offsets + validity masks (zero-padding emulation) ---
    p = np.arange(HWp)
    rows, cols = p // W, p % W
    offs, masks_np, needs_mask = [], [], []
    for dy in (-1, 0, 1):
        for dx in (-1, 0, 1):
            offs.append(dy * W + dx)
            valid = ((rows + dy >= 0) & (rows + dy < H) &
                     (cols + dx >= 0) & (cols + dx < W))
            masks_np.append(valid)
            needs_mask.append(not bool(valid[:HW].all()))
    masks = jnp.asarray(np.stack(masks_np).astype(np.float32))      # (9, HWp)

    # ---- generation-aware batch blocking & VMEM budget ----------------------
    itemsize = x_flat.dtype.itemsize
    bytes_per_image = (C + O) * HWp * itemsize            # input + output block
    phys_vmem = _tpu_vmem_capacity_bytes()
    # ~12.8 MiB of block data on 128 MiB parts (v5e/v6e), ~6.4 MiB on v7x.
    block_budget = max(2 << 20, min(14 << 20, phys_vmem // 10))
    nb = _pick_batch_block(N, bytes_per_image, block_budget)
    grid = (N // nb,)

    resident = (w_big.size + bf.size + masks.size) * 4
    # Honest accounting: 2x double buffering for input AND output blocks,
    # resident weights/masks, 2 MiB slack; cap at ~70% of physical VMEM
    # (<= ~45 MiB on v7x, <= ~90 MiB on v5e/v6e) instead of a hard 32 MiB cap.
    needed = 2 * nb * bytes_per_image + 2 * resident + (2 << 20)
    vmem_limit = int(min(max(needed, 16 << 20),
                         max(int(phys_vmem * 0.7), 16 << 20)))

    kernel = functools.partial(_dwsep_kernel, offs=tuple(offs),
                               needs_mask=tuple(needs_mask), nb=nb,
                               mxu_dtype=mxu_dtype)

    out_flat = pl.pallas_call(
        kernel,
        out_shape=jax.ShapeDtypeStruct((N, O, HWp), x_nchw.dtype),
        grid_spec=pltpu.PrefetchScalarGridSpec(
            num_scalar_prefetch=0,
            grid=grid,
            in_specs=[
                pl.BlockSpec((nb, C, HWp), lambda n: (n, 0, 0)),
                pl.BlockSpec((O, 9 * C), lambda n: (0, 0)),
                pl.BlockSpec((O, 1), lambda n: (0, 0)),
                pl.BlockSpec((9, HWp), lambda n: (0, 0)),
            ],
            out_specs=pl.BlockSpec((nb, O, HWp), lambda n: (n, 0, 0)),
        ),
        compiler_params=pltpu.CompilerParams(
            dimension_semantics=("parallel",),
            vmem_limit_bytes=vmem_limit),
    )(x_flat, w_big, bf, masks)

    # Lane-dense kernel output (N, O, HWp) -> NCHW (drop lane pad, reshape).
    return out_flat[:, :, :HW].reshape(N, O, H, W)


def _reference(x_nchw, dw, db, pw, pb):
    """Pure-JAX reference using lax.conv_general_dilated (matches PyTorch)."""
    C = x_nchw.shape[1]
    out = jax.lax.conv_general_dilated(
        x_nchw, dw, window_strides=(1, 1), padding=((1, 1), (1, 1)),
        feature_group_count=C,
        dimension_numbers=("NCHW", "OIHW", "NCHW"))
    out = out + db.reshape(1, -1, 1, 1)
    out = jax.lax.conv_general_dilated(
        out, pw, window_strides=(1, 1), padding="VALID",
        dimension_numbers=("NCHW", "OIHW", "NCHW"))
    out = out + pb.reshape(1, -1, 1, 1)
    return out


if __name__ == "__main__":
    N, C, H, W = 2, 4, 16, 16
    OUT_C = 8

    key = jax.random.PRNGKey(0)
    kx, kdw, kdb, kpw, kpb = jax.random.split(key, 5)

    x = jax.random.normal(kx, (N, C, H, W), dtype=jnp.float32)
    dw = jax.random.normal(kdw, (C, 1, 3, 3), dtype=jnp.float32) * 0.1   # depthwise weight
    db = jax.random.normal(kdb, (C,), dtype=jnp.float32) * 0.1           # depthwise bias
    pw = jax.random.normal(kpw, (OUT_C, C, 1, 1), dtype=jnp.float32) * 0.1  # pointwise weight
    pb = jax.random.normal(kpb, (OUT_C,), dtype=jnp.float32) * 0.1          # pointwise bias

    ref = _reference(x, dw, db, pw, pb)

    # Full-precision MXU-operand path: strict check.
    out_f32 = jax.block_until_ready(
        depthwise_separable_conv(x, dw, db, pw, pb, mxu_dtype=jnp.float32))
    assert out_f32.shape == (N, OUT_C, H, W), out_f32.shape
    assert jnp.allclose(out_f32, ref, atol=1e-4, rtol=1e-4), \
        float(jnp.max(jnp.abs(out_f32 - ref)))

    # Default fast path (bf16 MXU operands, f32 accumulation): looser check.
    out_bf16 = jax.block_until_ready(depthwise_separable_conv(x, dw, db, pw, pb))
    assert out_bf16.shape == (N, OUT_C, H, W), out_bf16.shape
    assert jnp.allclose(out_bf16, ref, atol=2e-2, rtol=2e-2), \
        float(jnp.max(jnp.abs(out_bf16 - ref)))

    # Larger batch: exercises the batched (nb > 1) fori_loop path.
    x4 = jax.random.normal(kx, (4, C, H, W), dtype=jnp.float32)
    ref4 = _reference(x4, dw, db, pw, pb)
    out4 = jax.block_until_ready(
        depthwise_separable_conv(x4, dw, db, pw, pb, mxu_dtype=jnp.float32))
    assert jnp.allclose(out4, ref4, atol=1e-4, rtol=1e-4), \
        float(jnp.max(jnp.abs(out4 - ref4)))

    print("KERNEL_OK")
</pallas_src>

<mosaic_0001>
module attributes {stable_mosaic.version = 11 : i64} {
  func.func @_dwsep_kernel(%arg0: i32, %arg1: memref<1x4x256xf32, #tpu.memory_space<vmem>>, %arg2: memref<8x36xf32, #tpu.memory_space<vmem>>, %arg3: memref<8x1xf32, #tpu.memory_space<vmem>>, %arg4: memref<9x256xf32, #tpu.memory_space<vmem>>, %arg5: memref<1x8x256xf32, #tpu.memory_space<vmem>>) attributes {dimension_semantics = [#tpu.dimension_semantics<parallel>], iteration_bounds = array<i64: 2>, scalar_prefetch = 0 : i64, scratch_operands = 0 : i64, tpu.core_type = #tpu.core_type<tc>, window_params = [{transform_indices = @transform_0, window_bounds = array<i64: 1, 4, 256>}, {pipeline_mode = #tpu.pipeline_mode<synchronous>, transform_indices = @transform_1, window_bounds = array<i64: 8, 36>}, {pipeline_mode = #tpu.pipeline_mode<synchronous>, transform_indices = @transform_2, window_bounds = array<i64: 8, 1>}, {pipeline_mode = #tpu.pipeline_mode<synchronous>, transform_indices = @transform_3, window_bounds = array<i64: 9, 256>}, {transform_indices = @transform_4, window_bounds = array<i64: 1, 8, 256>}]} {
    %c0 = arith.constant 0 : index
    %c0_0 = arith.constant 0 : index
    %0 = vector.load %arg2[%c0, %c0_0] : memref<8x36xf32, #tpu.memory_space<vmem>>, vector<8x36xf32>
    %c0_1 = arith.constant 0 : index
    %c0_2 = arith.constant 0 : index
    %1 = vector.load %arg3[%c0_1, %c0_2] : memref<8x1xf32, #tpu.memory_space<vmem>>, vector<8x1xf32>
    %c0_3 = arith.constant 0 : index
    %c0_4 = arith.constant 0 : index
    %2 = vector.load %arg4[%c0_3, %c0_4] : memref<9x256xf32, #tpu.memory_space<vmem>>, vector<9x256xf32>
    %cst = arith.constant 5.000000e-01 : f32
    %3 = vector.broadcast %cst : f32 to vector<9x256xf32>
    %4 = arith.cmpf ogt, %2, %3 : vector<9x256xf32>
    %5 = vector.extract_strided_slice %4 {offsets = [0, 0], sizes = [1, 256], strides = [1, 1]} : vector<9x256xi1> to vector<1x256xi1>
    %6 = vector.extract_strided_slice %4 {offsets = [1, 0], sizes = [1, 256], strides = [1, 1]} : vector<9x256xi1> to vector<1x256xi1>
    %7 = vector.extract_strided_slice %4 {offsets = [2, 0], sizes = [1, 256], strides = [1, 1]} : vector<9x256xi1> to vector<1x256xi1>
    %8 = vector.extract_strided_slice %4 {offsets = [3, 0], sizes = [1, 256], strides = [1, 1]} : vector<9x256xi1> to vector<1x256xi1>
    %9 = vector.extract_strided_slice %4 {offsets = [5, 0], sizes = [1, 256], strides = [1, 1]} : vector<9x256xi1> to vector<1x256xi1>
    %10 = vector.extract_strided_slice %4 {offsets = [6, 0], sizes = [1, 256], strides = [1, 1]} : vector<9x256xi1> to vector<1x256xi1>
    %11 = vector.extract_strided_slice %4 {offsets = [7, 0], sizes = [1, 256], strides = [1, 1]} : vector<9x256xi1> to vector<1x256xi1>
    %12 = vector.extract_strided_slice %4 {offsets = [8, 0], sizes = [1, 256], strides = [1, 1]} : vector<9x256xi1> to vector<1x256xi1>
    %c0_5 = arith.constant 0 : index
    %c0_6 = arith.constant 0 : index
    %c0_7 = arith.constant 0 : index
    %13 = vector.load %arg1[%c0_5, %c0_6, %c0_7] : memref<1x4x256xf32, #tpu.memory_space<vmem>>, vector<1x4x256xf32>
    %14 = vector.shape_cast %13 : vector<1x4x256xf32> to vector<4x256xf32>
    %15 = vector.extract_strided_slice %14 {offsets = [0, 239], sizes = [4, 17], strides = [1, 1]} : vector<4x256xf32> to vector<4x17xf32>
    %16 = vector.extract_strided_slice %14 {offsets = [0, 0], sizes = [4, 239], strides = [1, 1]} : vector<4x256xf32> to vector<4x239xf32>
    %17 = tpu.concatenate %15, %16 in 1 : vector<4x17xf32>, vector<4x239xf32> -> vector<4x256xf32>
    %cst_8 = arith.constant 0.000000e+00 : f32
    %18 = vector.broadcast %cst_8 : f32 to vector<4x256xf32>
    %19 = vector.shape_cast %5 : vector<1x256xi1> to vector<1x256xi1>
    %20 = vector.broadcast %19 : vector<1x256xi1> to vector<4x256xi1>
    %21 = arith.select %20, %17, %18 : vector<4x256xi1>, vector<4x256xf32>
    %22 = vector.extract_strided_slice %14 {offsets = [0, 240], sizes = [4, 16], strides = [1, 1]} : vector<4x256xf32> to vector<4x16xf32>
    %23 = vector.extract_strided_slice %14 {offsets = [0, 0], sizes = [4, 240], strides = [1, 1]} : vector<4x256xf32> to vector<4x240xf32>
    %24 = tpu.concatenate %22, %23 in 1 : vector<4x16xf32>, vector<4x240xf32> -> vector<4x256xf32>
    %cst_9 = arith.constant 0.000000e+00 : f32
    %25 = vector.broadcast %cst_9 : f32 to vector<4x256xf32>
    %26 = vector.shape_cast %6 : vector<1x256xi1> to vector<1x256xi1>
    %27 = vector.broadcast %26 : vector<1x256xi1> to vector<4x256xi1>
    %28 = arith.select %27, %24, %25 : vector<4x256xi1>, vector<4x256xf32>
    %29 = vector.extract_strided_slice %14 {offsets = [0, 241], sizes = [4, 15], strides = [1, 1]} : vector<4x256xf32> to vector<4x15xf32>
    %30 = vector.extract_strided_slice %14 {offsets = [0, 0], sizes = [4, 241], strides = [1, 1]} : vector<4x256xf32> to vector<4x241xf32>
    %31 = tpu.concatenate %29, %30 in 1 : vector<4x15xf32>, vector<4x241xf32> -> vector<4x256xf32>
    %cst_10 = arith.constant 0.000000e+00 : f32
    %32 = vector.broadcast %cst_10 : f32 to vector<4x256xf32>
    %33 = vector.shape_cast %7 : vector<1x256xi1> to vector<1x256xi1>
    %34 = vector.broadcast %33 : vector<1x256xi1> to vector<4x256xi1>
    %35 = arith.select %34, %31, %32 : vector<4x256xi1>, vector<4x256xf32>
    %36 = vector.extract_strided_slice %14 {offsets = [0, 255], sizes = [4, 1], strides = [1, 1]} : vector<4x256xf32> to vector<4x1xf32>
    %37 = vector.extract_strided_slice %14 {offsets = [0, 0], sizes = [4, 255], strides = [1, 1]} : vector<4x256xf32> to vector<4x255xf32>
    %38 = tpu.concatenate %36, %37 in 1 : vector<4x1xf32>, vector<4x255xf32> -> vector<4x256xf32>
    %cst_11 = arith.constant 0.000000e+00 : f32
    %39 = vector.broadcast %cst_11 : f32 to vector<4x256xf32>
    %40 = vector.shape_cast %8 : vector<1x256xi1> to vector<1x256xi1>
    %41 = vector.broadcast %40 : vector<1x256xi1> to vector<4x256xi1>
    %42 = arith.select %41, %38, %39 : vector<4x256xi1>, vector<4x256xf32>
    %43 = vector.extract_strided_slice %14 {offsets = [0, 1], sizes = [4, 255], strides = [1, 1]} : vector<4x256xf32> to vector<4x255xf32>
    %44 = vector.extract_strided_slice %14 {offsets = [0, 0], sizes = [4, 1], strides = [1, 1]} : vector<4x256xf32> to vector<4x1xf32>
    %45 = tpu.concatenate %43, %44 in 1 : vector<4x255xf32>, vector<4x1xf32> -> vector<4x256xf32>
    %cst_12 = arith.constant 0.000000e+00 : f32
    %46 = vector.broadcast %cst_12 : f32 to vector<4x256xf32>
    %47 = vector.shape_cast %9 : vector<1x256xi1> to vector<1x256xi1>
    %48 = vector.broadcast %47 : vector<1x256xi1> to vector<4x256xi1>
    %49 = arith.select %48, %45, %46 : vector<4x256xi1>, vector<4x256xf32>
    %50 = vector.extract_strided_slice %14 {offsets = [0, 15], sizes = [4, 241], strides = [1, 1]} : vector<4x256xf32> to vector<4x241xf32>
    %51 = vector.extract_strided_slice %14 {offsets = [0, 0], sizes = [4, 15], strides = [1, 1]} : vector<4x256xf32> to vector<4x15xf32>
    %52 = tpu.concatenate %50, %51 in 1 : vector<4x241xf32>, vector<4x15xf32> -> vector<4x256xf32>
    %cst_13 = arith.constant 0.000000e+00 : f32
    %53 = vector.broadcast %cst_13 : f32 to vector<4x256xf32>
    %54 = vector.shape_cast %10 : vector<1x256xi1> to vector<1x256xi1>
    %55 = vector.broadcast %54 : vector<1x256xi1> to vector<4x256xi1>
    %56 = arith.select %55, %52, %53 : vector<4x256xi1>, vector<4x256xf32>
    %57 = vector.extract_strided_slice %14 {offsets = [0, 16], sizes = [4, 240], strides = [1, 1]} : vector<4x256xf32> to vector<4x240xf32>
    %58 = vector.extract_strided_slice %14 {offsets = [0, 0], sizes = [4, 16], strides = [1, 1]} : vector<4x256xf32> to vector<4x16xf32>
    %59 = tpu.concatenate %57, %58 in 1 : vector<4x240xf32>, vector<4x16xf32> -> vector<4x256xf32>
    %cst_14 = arith.constant 0.000000e+00 : f32
    %60 = vector.broadcast %cst_14 : f32 to vector<4x256xf32>
    %61 = vector.shape_cast %11 : vector<1x256xi1> to vector<1x256xi1>
    %62 = vector.broadcast %61 : vector<1x256xi1> to vector<4x256xi1>
    %63 = arith.select %62, %59, %60 : vector<4x256xi1>, vector<4x256xf32>
    %64 = vector.extract_strided_slice %14 {offsets = [0, 17], sizes = [4, 239], strides = [1, 1]} : vector<4x256xf32> to vector<4x239xf32>
    %65 = vector.extract_strided_slice %14 {offsets = [0, 0], sizes = [4, 17], strides = [1, 1]} : vector<4x256xf32> to vector<4x17xf32>
    %66 = tpu.concatenate %64, %65 in 1 : vector<4x239xf32>, vector<4x17xf32> -> vector<4x256xf32>
    %cst_15 = arith.constant 0.000000e+00 : f32
    %67 = vector.broadcast %cst_15 : f32 to vector<4x256xf32>
    %68 = vector.shape_cast %12 : vector<1x256xi1> to vector<1x256xi1>
    %69 = vector.broadcast %68 : vector<1x256xi1> to vector<4x256xi1>
    %70 = arith.select %69, %66, %67 : vector<4x256xi1>, vector<4x256xf32>
    %71 = tpu.concatenate %21, %28, %35, %42, %14, %49, %56, %63, %70 in 0 : vector<4x256xf32>, vector<4x256xf32>, vector<4x256xf32>, vector<4x256xf32>, vector<4x256xf32>, vector<4x256xf32>, vector<4x256xf32>, vector<4x256xf32>, vector<4x256xf32> -> vector<36x256xf32>
    %cst_16 = arith.constant dense<0.000000e+00> : vector<8x256xf32>
    %72 = tpu.matmul %0, %71, %cst_16 {dimension_numbers = #tpu.dot_dimension_numbers<[1], [0], [0], [1], [0, 0, 1, 1], [], []>} : vector<8x36xf32>, vector<36x256xf32>, vector<8x256xf32> -> vector<8x256xf32>
    %73 = vector.broadcast %1 : vector<8x1xf32> to vector<8x256xf32>
    %74 = arith.addf %72, %73 : vector<8x256xf32>
    %c0_17 = arith.constant 0 : index
    %c0_18 = arith.constant 0 : index
    %c0_19 = arith.constant 0 : index
    %75 = vector.load %arg5[%c0_17, %c0_18, %c0_19] : memref<1x8x256xf32, #tpu.memory_space<vmem>>, vector<1x8x256xf32>
    %76 = vector.shape_cast %75 : vector<1x8x256xf32> to vector<8x256xf32>
    %77 = vector.shape_cast %74 : vector<8x256xf32> to vector<1x8x256xf32>
    tpu.vector_store %arg5[%c0_17, %c0_18, %c0_19], %77 {strides = array<i32>} : memref<1x8x256xf32, #tpu.memory_space<vmem>>, vector<1x8x256xf32>,
    return
  }
  func.func @transform_0(%arg0: i32) -> (i32, i32, i32) {
    %c0_i32 = arith.constant 0 : i32
    %c0_i32_0 = arith.constant 0 : i32
    %c0_i32_1 = arith.constant 0 : i32
    return %arg0, %c0_i32, %c0_i32_0 : i32, i32, i32
  }
  func.func @transform_1(%arg0: i32) -> (i32, i32) {
    %c0_i32 = arith.constant 0 : i32
    %c0_i32_0 = arith.constant 0 : i32
    %c0_i32_1 = arith.constant 0 : i32
    return %c0_i32, %c0_i32_0 : i32, i32
  }
  func.func @transform_2(%arg0: i32) -> (i32, i32) {
    %c0_i32 = arith.constant 0 : i32
    %c0_i32_0 = arith.constant 0 : i32
    %c0_i32_1 = arith.constant 0 : i32
    return %c0_i32, %c0_i32_0 : i32, i32
  }
  func.func @transform_3(%arg0: i32) -> (i32, i32) {
    %c0_i32 = arith.constant 0 : i32
    %c0_i32_0 = arith.constant 0 : i32
    %c0_i32_1 = arith.constant 0 : i32
    return %c0_i32, %c0_i32_0 : i32, i32
  }
  func.func @transform_4(%arg0: i32) -> (i32, i32, i32) {
    %c0_i32 = arith.constant 0 : i32
    %c0_i32_0 = arith.constant 0 : i32
    %c0_i32_1 = arith.constant 0 : i32
    return %arg0, %c0_i32, %c0_i32_0 : i32, i32, i32
  }
}

</mosaic_0001>

<bundles_post_ra>
// kernel: tpu_custom_call.1
= control target key start
LH: loop header
LB: loop body
LE: loop exit
PB: predicated region body
PF: predicated region fallthrough
CT: control target
= control target key end

     0   :  { %9 = vsyncpa [#allocation3], 0  ;;  %s1916_s0 = inlined_call_operand.hbm [shape: f32[2,4,256], index: 0, kind: input, shape index: {}]   ;;  %s1917_s1 = inlined_call_operand.vmem [shape: f32[8,36], index: 1, kind: input, shape index: {}]   ;;  %s1918_s2 = inlined_call_operand.vmem [shape: f32[8,1], index: 2, kind: input, shape index: {}]   ;;  %s1919_s3 = inlined_call_operand.hbm [shape: f32[9,256], index: 3, kind: input, shape index: {}]   ;;  %s1920_s4 = inlined_call_operand.hbm [shape: f32[2,8,256], index: 4, kind: output, shape index: {}]  }
   0x1   :  { %11 = vsyncpa [#allocation3 + $0x1], 0 }
   0x2   :  { %12 = vsyncpa [#allocation6], 0 }
   0x3   :  { %13 = vsyncpa [#allocation4], 0 }
   0x4   :  { %15 = vsyncpa [#allocation4 + $0x1], 0  ;;  %s1195_s15 = smov 0   ;;  %s1197_s16 = smov 0  }
   0x5   :  { %s1199_s17 = smov 0   ;;  %s1201_s18 = smov 0  }
   0x6 LB: > { %s1216_s19 = sadd.s32 4294967295, %s1153_s18   ;;  %s889_s20 = sadd.s32 4294967294, %s1153_s18   ;;  %s1153_s18 = sphi %s1201_s18, %s2020_s18   ;;  %s1149_s17 = sphi %s1199_s17, %s2019_s17   ;;  %s1145_s16 = sphi %s1197_s16, %s2018_s16   ;;  %s1141_s15 = sphi %s1195_s15, %s2017_s15  }
   0x7   : > { %p41_p0 = scmp.ne.s32.totalorder %s1145_s16, %s1141_s15  ;;  %p1921_p1 = scmp.eq.s32.totalorder %s1216_s19, 0 }
   0x8   : > { %p134_p3 = scmp.eq.s32.totalorder %s889_s20, 1  ;;  %p890_p5 = scmp.ge.s32.totalorder %s1153_s18, 1 }
   0x9   : > { %p1225_p4 = por %p1921_p1, %p41_p0  ;;  %p141_p7 = scmp.lt.s32.totalorder %s1153_s18, 3 }
   0xa   : > { %p1230_p6 = por %p134_p3, %p41_p0  ;;  %s1155_s24 = smov [#allocation5]  }
   0xb   : > { %s1934_s21 = scalar_select %p1225_p4, 1, 0 }
   0xc   : > { %s1935_s22 = scalar_select %p1230_p6, 1, 0 }
   0xd   : > { %p1235_p8 = pnand %p890_p5, %p141_p7  ;;  %s159_s25 = sshll.u32 %s1155_s24, 4  ;;  %s1239_s25 = int_to_ptr.vmem [resolvable:$true] %s159_s25 }
   0xe   : > { %s1251_s27 = sadd.s32 1, %s1153_s18   ;;  %s28_s28 = sadd.s32 1, %s1149_s17 }
   0xf   : > { %s1936_s23 = scalar_select %p1235_p8, 1, 0 }
  0x10   : > { %p926_p9 = pneg %p1235_p8  ;;  %s25_s29 = ssub.s32 %s1153_s18, %s1251_s27 }
  0x11   : > { %s1025_s6 = scalar_lea.hbm %s1919_s3, 512 }
  0x12   : > { %p1246_p11 = pnand %p926_p9, %p1921_p1  ;;  %p1026_p12 = scmp.ne.s32.totalorder %s1919_s3, %s1025_s6 }
  0x13   : > { %p1032_p5 = scmp.lt.u32.totalorder %s1025_s6, %s1919_s3 }
  0x14   : > { %p1027_p13 = pneg %p1246_p11 }
  0x16   : > { %p1028_p0 = pnand %p1027_p13, %p1026_p12 }
  0x18   : > { %p1029_p3 = pneg %p1028_p0 }
  0x1a   : > { %p1034_p7 = pnand %p1032_p5, %p1029_p3 }
  0x1c   : > { %1037 = shalt.err (!%p1034_p7)
}
  0x1d   : > { %s1038_s11 = scalar_lea.vmem %s1239_s25, 512  ;;  %p1046_p2 = scmp.lt.s32.totalorder %s1239_s25, %s1239_s25 }
  0x1e   : > { %p1039_p9 = scmp.ne.s32.totalorder %s1239_s25, %s1038_s11  ;;  %p1047_p6 = scmp.lt.s32.totalorder %s1038_s11, %s1038_s11 }
  0x20   : > { %p1041_p10 = pnand %p1039_p9, %p1027_p13  ;;  %p1048_p4 = por %p1047_p6, %p1046_p2 }
  0x22   : > { %p1042_p1 = pneg %p1041_p10 }
  0x24   : > { %p1049_p8 = pnand %p1048_p4, %p1042_p1 }
  0x26   : > { %1052 = shalt.err (!%p1049_p8)
}
  0x27   : > { %s1156_s12 = smov 256   ;;  %s1157_s13 = smov 16  }
  0x28   : > { %929 = dma.hbm_to_vmem [thread:$0]  (!%p1246_p11), %s1919_s3, 512, %s1239_s25, [#allocation6], %s1156_s12, %s1156_s12, %s1157_s13  }
  0x29   : > { %p26_p2 = scmp.eq.s32.totalorder %s25_s29, 0  ;;  %p35_p1 = scmp.ne.s32.totalorder %s1149_s17, %s1145_s16 }
  0x2a   : > { %p36_p4 = scmp.eq.s32.totalorder %s1153_s18, 0  ;;  %p939_p6 = scmp.lt.s32.totalorder %s1153_s18, 2 }
  0x2b   : > { %s1282_s24 = scalar_select %p26_p2, %s1149_s17, %s28_s28  }
  0x2c   : > { %p37_p8 = por %p36_p4, %p35_p1  ;;  %p1938_p10 = scmp.eq.s32.totalorder %s1216_s19, 1 }
  0x2d   : > { %s173_s5 = sand.u32 1, %s1149_s17   ;;  %s908_s6 = sshll.u32 %s1153_s18, 7 }
  0x2e   : > { %p1286_p12 = por %p1938_p10, %p35_p1  ;;  %s893_s7 = sshll.u32 %s173_s5, 3 }
  0x2f   : > { %s1295_s9 = scalar_lea.hbm %s1916_s0, %s908_s6  ;;  %s177_s25 = scalar_lea.vmem [#allocation2], %s893_s7 }
  0x30   : > { %s185_s28 = sshll.u32 %s177_s25, 4  ;;  %p1297_p11 = pnand %p939_p6, %p37_p8  ;;  %s1301_s28 = int_to_ptr.vmem [resolvable:$true] %s185_s28 }
  0x31   : > { %s174_s10 = scalar_lea.sflag [#allocation3], %s173_s5  ;;  %s1053_s11 = scalar_lea.hbm %s1295_s9, 128 }
  0x32   : > { %p1054_p13 = scmp.ne.s32.totalorder %s1295_s9, %s1053_s11  ;;  %p1055_p0 = pneg %p1297_p11 }
  0x33   : > { %s1058_s14 = scalar_lea.hbm %s1916_s0, 256  ;;  %p1059_p7 = scmp.lt.u32.totalorder %s1295_s9, %s1916_s0 }
  0x34   : > { %p1056_p3 = pnand %p1055_p0, %p1054_p13  ;;  %p1060_p9 = scmp.lt.u32.totalorder %s1058_s14, %s1053_s11 }
  0x35   : > { %p1062_p1 = scmp.lt.u32.totalorder %s1053_s11, %s1295_s9 }
  0x36   : > { %p1057_p5 = pneg %p1056_p3  ;;  %p1061_p2 = por %p1060_p9, %p1059_p7 }
  0x38   : > { %p1063_p4 = por %p1062_p1, %p1061_p2 }
  0x3a   : > { %p1064_p6 = pnand %p1063_p4, %p1057_p5 }
  0x3c   : > { %1067 = shalt.err (!%p1064_p6)
}
  0x3d   : > { %s1068_s5 = scalar_lea.vmem %s1301_s28, 128  ;;  %s1158_s7 = smov [#allocation2]  }
  0x3e   : > { %p1069_p8 = scmp.ne.s32.totalorder %s1301_s28, %s1068_s5  ;;  %s1073_s26 = sshll.u32 %s1158_s7, 4  ;;  %s1074_s26 = int_to_ptr.vmem [resolvable:$false] %s1073_s26 }
  0x3f   : > { %s1075_s8 = scalar_lea.vmem %s1074_s26, 256  ;;  %p1076_p3 = scmp.lt.s32.totalorder %s1301_s28, %s1074_s26 }
  0x40   : > { %p1071_p10 = pnand %p1069_p8, %p1055_p0  ;;  %p1077_p7 = scmp.lt.s32.totalorder %s1075_s8, %s1068_s5 }
  0x42   : > { %p1072_p13 = pneg %p1071_p10  ;;  %p1078_p9 = por %p1077_p7, %p1076_p3 }
  0x44   : > { %p1079_p2 = pnand %p1078_p9, %p1072_p13 }
  0x46   : > { %1082 = shalt.err (!%p1079_p2)
}
  0x47   : > { %933 = dma.hbm_to_vmem [thread:$0]  (!%p1297_p11), %s1295_s9, 128, %s1301_s28, %s174_s10  }
  0x48   : > { %p1941_p5 = scmp.ne.s32.totalorder %s1936_s23, 0 }
  0x4a   : > { %194 = sbr.rel (%p1941_p5) target bundleno = 511 (0x1ff), region = 36 }
  0x51   : > { %s1331_s25 = sand.u32 1, %s1145_s16   ;;  %p1942_p0 = scmp.ne.s32.totalorder %s1934_s21, 0 }
  0x52   : > { %s897_s11 = sshll.u32 %s1331_s25, 3  ;;  %s197_s12 = scalar_lea.sflag [#allocation3], %s1331_s25 }
  0x53   : > { %s200_s13 = scalar_lea.vmem [#allocation2], %s897_s11 }
  0x54   : > { %1128 = dma.done.wait (%p1942_p0), %s197_s12, 128  }
  0x55   : > { %1130 = vsyncadd (%p1942_p0), %s197_s12, 4294967168  ;;  %p1943_p1 = scmp.eq.s32.totalorder %s1216_s19, 0 }
  0x57   : > { %1132 = dma.done.wait (%p1943_p1), [#allocation6], 512   ;;  %p1944_p11 = pmov %p1943_p1 }
  0x58   : > { %v1343_v0 = vld [vmem:[%s200_s13] sm:$0xff]  ;;  %s1159_s23 = smov 15   ;;  %s1160_s9 = smov 17   ;;  %v1167_v4 = vmov 0.0   ;;  %v1168_v6 = vmov 0   ;;  %vm315_vm0 = vcmask 121856  }
  0x59   : > { %1134 = vsyncadd (%p1944_p11), [#allocation6], 4294966784  ;;  %1945 = vst [vmem:[#allocation11_spill] sm:$0xff] %v1343_v0  ;;  %v1347_v1 = vcombine.high %v1343_v0, %v1343_v0  ;;  %s1161_s21 = smov 1   ;;  %s1162_s28 = smov 16   ;;  %785 = vmatprep.mubr.f32.mxu0 %v1167_v4  ;;  %v230_v5 = vld [vmem:[%s1918_s2] sm:$0xff]  ;;  %1022 = vset.pattern.permute.xlu1 %v1168_v6 }
  0x5a   : > { %s1163_s29 = smov 127   ;;  %s1164_s10 = smov 113   ;;  %1023 = vset.pattern.permute.xlu0 %v1168_v6  ;;  %vm247_vm1 = vcmask 138240   ;;  %v1358_v13 = vld [vmem:[#allocation5] sm:$0xff]  ;;  %v1360_v14 = vld [vmem:[#allocation5 + $0x8] sm:$0xff]  ;;  %vm347_vm2 = vcmask 7168  }
  0x5b   : > { %v997_v2 = vpack.i.bf16 %v1343_v0, %v1347_v1  ;;  %v1007_v3 = vpack.i.bf16 %v1347_v1, %v1343_v0  ;;  %s1165_s14 = smov 112   ;;  %s1166_s20 = smov 111   ;;  %vm235_vm3 = vcmp.gt.f32.partialorder %v1358_v13, 0.5  ;;  %vm236_vm4 = vcmp.gt.f32.partialorder %v1360_v14, 0.5 }
  0x5c   : > { %vm283_vm5 = vcmask 130048   ;;  %vm378_vm6 = vcmask 1039360   ;;  %vm412_vm7 = vcmask 924672   ;;  %vm446_vm8 = vcmask 916480   ;;  %s899_s8 = sshll.u32 %s1331_s25, 4  ;;  %s909_s11 = sshll.u32 %s1216_s19, 8 }
  0x5d   : > { %998 = vrot.lane.b32.xlu1 %v997_v2, %s1159_s23  ;;  %988 = vrot.lane.b32.xlu0 %v997_v2, %s1160_s9  ;;  %vm480_vm9 = vcmask 908288   ;;  %vm521_vm12 = vcmask 1041409   ;;  %vm524_vm13 = vcmask 1042434   ;;  %vm547_vm14 = vcmask 1045509   ;;  %s228_s12 = scalar_lea.vmem [#allocation7], %s899_s8 }
  0x5e   : > { %vm527_vm15 = vcmask 1043459   ;;  %s809_s13 = sshll.u32 %s228_s12, 4  ;;  %s1874_s13 = int_to_ptr.vmem [resolvable:$true] %s809_s13 }
  0x5f   : > { %s1083_s19 = scalar_lea.vmem %s1874_s13, 256 }
  0x60   : > { %v2011_v13 = vld [vmem:[#allocation11_spill] sm:$0xff]  ;;  %p1084_p4 = scmp.ne.s32.totalorder %s1874_s13, %s1083_s19 }
  0x61   : > { %1003 = vrot.lane.b32.xlu1 %v997_v2, %s1161_s21  ;;  %993 = vrot.lane.b32.xlu0 %v997_v2, %s1162_s28  ;;  %s1872_s21 = scalar_lea.hbm %s1920_s4, %s909_s11  ;;  %s795_s28 = scalar_lea.sflag [#allocation4], %s1331_s25 }
  0x62   : > { %p1085_p6 = pnand %p1084_p4, %p1286_p12 }
  0x64   : > { %p1086_p8 = pneg %p1085_p6 }
  0x65   : > { %1008 = vrot.lane.b32.xlu0 %v1007_v3, %s1163_s29  ;;  %1013 = vrot.lane.b32.xlu1 %v1007_v3, %s1164_s10  ;;  %s1169_s29 = smov [#allocation7]  }
  0x66   : > { %s1087_s10 = sshll.u32 %s1169_s29, 4  ;;  %s1088_s10 = int_to_ptr.vmem [resolvable:$false] %s1087_s10 }
  0x67   : > { %p1090_p10 = scmp.lt.s32.totalorder %s1874_s13, %s1088_s10 }
  0x69   : > { %1018 = vrot.lane.b32.xlu0 %v1007_v3, %s1165_s14  ;;  %476 = vrot.lane.b32.xlu1 %v1343_v0, %s1166_s20  ;;  %s1089_s14 = scalar_lea.vmem %s1088_s10, 512 }
  0x6a   : > { %p1091_p13 = scmp.lt.s32.totalorder %s1089_s14, %s1083_s19 }
  0x6c   : > { %p1092_p3 = por %p1091_p13, %p1090_p10 }
  0x6d   : > { %478 = vrot.lane.b32.xlu0 %v1347_v1, %s1166_s20  ;;  %710 = vperm.xlu1 %1022, %v230_v5  }
  0x6e   : > { %p1093_p7 = pnand %p1092_p3, %p1086_p8 }
  0xcf   : > { %v999_v7 = vpop.permute.xlu1 %998  ;;  %v989_v8 = vpop.permute.xlu0 %988 }
  0xd0   : > { %v1001_v9 = vunpack.i.h.bf16 %v999_v7  ;;  %v1000_v10 = vunpack.i.l.bf16 %v999_v7  ;;  %v991_v11 = vunpack.i.h.bf16 %v989_v8  ;;  %v990_v12 = vunpack.i.l.bf16 %v989_v8 }
  0xd2   : > { %v1362_v15 = vsel %vm315_vm0, %v1001_v9, %v1000_v10  ;;  %v1364_v16 = vsel %vm315_vm0, %v1000_v10, %v1001_v9  ;;  %v1366_v17 = vsel %vm247_vm1, %v991_v11, %v990_v12  ;;  %v1368_v18 = vsel %vm247_vm1, %v990_v12, %v991_v11 }
  0xd3   : > { %v320_v19 = vrot.slane %v1364_v16, 6  ;;  %v321_v20 = vrot.slane %v1362_v15, 6  ;;  %v322_v21 = vrot.slane %v1364_v16, 7  ;;  %v323_v22 = vrot.slane %v1362_v15, 7  ;;  %v994_v23 = vpop.permute.xlu0 %993  ;;  %v1004_v25 = vpop.permute.xlu1 %1003 }
  0xd4   : > { %v256_v24 = vrot.slane %v1368_v18, 1  ;;  %v257_v29 = vrot.slane %v1366_v17, 1  ;;  %v1006_v37 = vunpack.i.h.bf16 %v1004_v25  ;;  %v1005_v40 = vunpack.i.l.bf16 %v1004_v25 }
  0xd5   : > { %v1380_v27 = vsel %vm235_vm3, %v320_v19, 0.0  ;;  %v1384_v28 = vsel %vm235_vm3, %v322_v21, 0.0  ;;  %v1389_v30 = vsel %vm236_vm4, %v321_v20, 0.0  ;;  %v1393_v31 = vsel %vm236_vm4, %v323_v22, 0.0 }
  0xd6   : > { %v1401_v36 = vsel %vm235_vm3, %v256_v24, 0.0  ;;  %v996_v41 = vunpack.i.h.bf16 %v994_v23  ;;  %v995_v42 = vunpack.i.l.bf16 %v994_v23  ;;  %v1407_v43 = vsel %vm235_vm3, %v1368_v18, 0.0 }
  0xd7   : > { %v1009_v38 = vpop.permute.xlu0 %1008  ;;  %v1411_v44 = vsel %vm236_vm4, %v257_v29, 0.0  ;;  %v1014_v47 = vpop.permute.xlu1 %1013  ;;  %v1415_v48 = vsel %vm347_vm2, %v1006_v37, %v1005_v40  ;;  %v1418_v49 = vsel %vm347_vm2, %v1005_v40, %v1006_v37  ;;  %vm550_vm0 = vcmask 1046534  }
  0xd8   : > { %v1011_v46 = vunpack.i.h.bf16 %v1009_v38  ;;  %v1421_v50 = vsel %vm283_vm5, %v996_v41, %v995_v42  ;;  %v1424_v51 = vsel %vm283_vm5, %v995_v42, %v996_v41  ;;  %v352_v52 = vrot.slane %v1418_v49, 5 }
  0xd9   : > { %v353_v53 = vrot.slane %v1415_v48, 5  ;;  %v354_v54 = vrot.slane %v1418_v49, 6  ;;  %v355_v55 = vrot.slane %v1415_v48, 6  ;;  %v288_v56 = vrot.slane %v1424_v51, 7 }
  0xda   : > { %v1010_v57 = vunpack.i.l.bf16 %v1009_v38  ;;  %v1016_v58 = vunpack.i.h.bf16 %v1014_v47  ;;  %v1015_v59 = vunpack.i.l.bf16 %v1014_v47  ;;  %v1434_v61 = vsel %vm235_vm3, %v352_v52, 0.0 }
  0xdb   : > { %v1438_v62 = vsel %vm235_vm3, %v354_v54, 0.0  ;;  %v289_v63 = vrot.slane %v1421_v50, 7  ;;  %v1444_v3 = vsel %vm236_vm4, %v353_v53, 0.0  ;;  %v1448_v4 = vsel %vm236_vm4, %v355_v55, 0.0  ;;  %v477_v26 = vpop.permute.xlu1 %476 }
  0xdc   : > { %v1457_v10 = vsel %vm235_vm3, %v288_v56, 0.0  ;;  %v1462_v11 = vsel %vm235_vm3, %v1424_v51, 0.0  ;;  %v1467_v12 = vsel %vm236_vm4, %v1421_v50, 0.0  ;;  %v1470_v19 = vsel %vm378_vm6, %v1010_v57, %v1011_v46 }
  0xdd   : > { %v1474_v20 = vsel %vm236_vm4, %v289_v63, 0.0  ;;  %v1477_v21 = vsel %vm378_vm6, %v1011_v46, %v1010_v57  ;;  %v384_v22 = vrot.slane %v1470_v19, 3  ;;  %v386_v23 = vrot.slane %v1470_v19, 4  ;;  %v1019_v63 = vpop.permute.xlu0 %1018  ;;  %v1523_v46 = vld [vmem:[#allocation5 + $0x10] sm:$0x1] }
  0xde   : > { %v385_v24 = vrot.slane %v1477_v21, 3  ;;  %v387_v25 = vrot.slane %v1477_v21, 4  ;;  %v388_v29 = vrot.slane %v1470_v19, 5  ;;  %v389_v37 = vrot.slane %v1477_v21, 5  ;;  %1946 = vst [vmem:[#allocation12_spill] sm:$0xff] %v1523_v46 }
  0xdf   : > { %v1490_v42 = vsel %vm235_vm3, %v384_v22, 0.0  ;;  %v1504_v54 = vsel %vm235_vm3, %v386_v23, 0.0  ;;  %v1521_v23 = vsel %vm412_vm7, %v1016_v58, %v1015_v59  ;;  %v1021_v5 = vunpack.i.h.bf16 %v1019_v63 }
  0xe0   : > { %v1496_v52 = vsel %vm236_vm4, %v385_v24, 0.0  ;;  %v1500_v53 = vsel %vm235_vm3, %v388_v29, 0.0  ;;  %v1508_v55 = vsel %vm236_vm4, %v387_v25, 0.0  ;;  %v1512_v56 = vsel %vm236_vm4, %v389_v37, 0.0  ;;  %v1525_v25 = vld [vmem:[#allocation5 + $0x18] sm:$0x1] }
  0xe1   : > { %v1518_v29 = vsel %vm412_vm7, %v1015_v59, %v1016_v58  ;;  %v419_v47 = vrot.slane %v1521_v23, 2  ;;  %v421_v22 = vrot.slane %v1521_v23, 3  ;;  %v423_v6 = vrot.slane %v1521_v23, 4 }
  0xe2   : > { %v418_v37 = vrot.slane %v1518_v29, 2  ;;  %v420_v57 = vrot.slane %v1518_v29, 3  ;;  %v422_v24 = vrot.slane %v1518_v29, 4  ;;  %v1020_v34 = vunpack.i.l.bf16 %v1019_v63  ;;  %v479_v63 = vpop.permute.xlu0 %478 }
  0xe3   : > { %v1539_v59 = vsel %vm236_vm4, %v419_v47, 0.0  ;;  %v1547_v40 = vsel %vm236_vm4, %v421_v22, 0.0  ;;  %vm237_vm10 = vcmp.gt.f32.partialorder %v1523_v46, 0.5  ;;  %vm238_vm11 = vcmp.gt.f32.partialorder %v1525_v25, 0.5 }
  0xe4   : > { %v1535_v58 = vsel %vm235_vm3, %v418_v37, 0.0  ;;  %v1543_v32 = vsel %vm235_vm3, %v420_v57, 0.0  ;;  %v1556_v47 = vsel %vm235_vm3, %v422_v24, 0.0  ;;  %v1560_v57 = vsel %vm236_vm4, %v423_v6, 0.0 }
  0xe5   : > { %1947 = vst [vmem:[#allocation13_spill] sm:$0xff] %v1556_v47  ;;  %v1568_v9 = vsel %vm446_vm8, %v1020_v34, %v1021_v5  ;;  %v1571_v24 = vsel %vm446_vm8, %v1021_v5, %v1020_v34  ;;  %v1581_v39 = vsel %vm480_vm9, %v477_v26, %v479_v63  ;;  %v484_v41 = vsel %vm480_vm9, %v479_v63, %v477_v26 }
  0xe6   : > { %1948 = vst [vmem:[#allocation14_spill] sm:$0xff] %v1568_v9  ;;  %v452_v6 = vrot.slane %v1568_v9, 1  ;;  %v453_v22 = vrot.slane %v1571_v24, 1  ;;  %v454_v45 = vrot.slane %v1568_v9, 2  ;;  %v455_v60 = vrot.slane %v1571_v24, 2  ;;  %1949 = vst [vmem:[#allocation15_spill] sm:$0xff] %v1581_v39 }
  0xe7   : > { %v456_v37 = vrot.slane %v1568_v9, 3  ;;  %v457_v38 = vrot.slane %v1571_v24, 3  ;;  %v491_v8 = vrot.slane %v484_v41, 1  ;;  %v493_v35 = vrot.slane %v484_v41, 2 }
  0xe8   : > { %v1586_v5 = vsel %vm235_vm3, %v452_v6, 0.0  ;;  %v1590_v33 = vsel %vm235_vm3, %v454_v45, 0.0  ;;  %v1595_v7 = vsel %vm236_vm4, %v453_v22, 0.0  ;;  %v1599_v2 = vsel %vm236_vm4, %v455_v60, 0.0 }
  0xe9   : > { %1950 = vst [vmem:[#allocation16_spill] sm:$0xff] %v1586_v5  ;;  %1951 = vst [vmem:[#allocation17_spill] sm:$0xff] %v1590_v33  ;;  %v1603_v34 = vsel %vm235_vm3, %v456_v37, 0.0  ;;  %v1607_v6 = vsel %vm236_vm4, %v457_v38, 0.0  ;;  %v490_v60 = vrot.slane %v1581_v39, 1  ;;  %v492_v37 = vrot.slane %v1581_v39, 2 }
  0xea   : > { %1952 = vst [vmem:[#allocation18_spill] sm:$0xff] %v1603_v34  ;;  %v495_v0 = vrot.slane %v484_v41, 3  ;;  %vm553_vm1 = vcmask 1047559   ;;  %v1622_v63 = vsel %vm237_vm10, %v1581_v39, 0.0  ;;  %v1630_v38 = vsel %vm238_vm11, %v491_v8, 0.0 }
  0xeb   : > { %1953 = vst [vmem:[#allocation19_spill] sm:$0xff] %v1622_v63  ;;  %v1626_v34 = vsel %vm237_vm10, %v490_v60, 0.0  ;;  %1955 = vst [vmem:[#allocation21_spill] sm:$0xff] %v1630_v38  ;;  %vm699_vm2 = vcmask 1043456   ;;  %v1634_v26 = vsel %vm238_vm11, %v484_v41, 0.0  ;;  %v1638_v22 = vsel %vm237_vm10, %v492_v37, 0.0 }
  0xec   : > { %1954 = vst [vmem:[#allocation20_spill] sm:$0xff] %v1626_v34  ;;  %1956 = vst [vmem:[#allocation22_spill] sm:$0xff] %v1634_v26  ;;  %v1642_v45 = vsel %vm238_vm11, %v493_v35, 0.0  ;;  %v1646_v60 = vsel %vm238_vm11, %v495_v0, 0.0  ;;  %v261_v9 = vrot.slane %v1366_v17, 3  ;;  %v271_v41 = vsel %vm236_vm4, %v1366_v17, 0.0 }
  0xed   : > { %1957 = vst [vmem:[#allocation23_spill] sm:$0xff] %v1638_v22  ;;  %1958 = vst [vmem:[#allocation24_spill] sm:$0xff] %v1646_v60  ;;  %v1959_v37 = vrot.slane %v1366_v17, 2  ;;  %v293_v22 = vrot.slane %v1421_v50, 2  ;;  %v1960_v0 = vrot.slane %v1421_v50, 1  ;;  %v325_v8 = vrot.slane %v1362_v15, 1 }
  0xee   : > { %v277_v63 = vsel %vm236_vm4, %v261_v9, 0.0  ;;  %v339_v34 = vsel %vm236_vm4, %v1362_v15, 0.0  ;;  %v1961_v17 = vrot.slane %v1415_v48, 7  ;;  %v373_v50 = vsel %vm236_vm4, %v1415_v48, 0.0 }
  0xef   : > { %v275_v35 = vsel %vm236_vm4, %v1959_v37, 0.0  ;;  %v307_v25 = vsel %vm236_vm4, %v1960_v0, 0.0  ;;  %v309_v0 = vsel %vm236_vm4, %v293_v22, 0.0  ;;  %v341_v60 = vsel %vm236_vm4, %v325_v8, 0.0 }
  0xf0   : > { %v371_v37 = vsel %vm236_vm4, %v1961_v17, 0.0  ;;  %v529_v9 = vrot.slane %v1411_v44, 7  ;;  %v531_v38 = vrot.slane %v275_v35, 6  ;;  %v533_v26 = vrot.slane %v277_v63, 5 }
  0xf1   : > { %v555_v15 = vrot.slane %v1474_v20, 5  ;;  %v558_v46 = vrot.slane %v307_v25, 3  ;;  %v560_v39 = vrot.slane %v309_v0, 2  ;;  %v578_v33 = vrot.slane %v1389_v30, 2 }
  0xf2   : > { %v530_v17 = vsel %vm521_vm12, %v529_v9, %v271_v41  ;;  %v579_v48 = vrot.slane %v1393_v31, 1  ;;  %v582_v5 = vrot.slane %v341_v60, 7  ;;  %v1962_v47 = vrot.slane %v1467_v12, 4 }
  0xf3   : > { %v532_v22 = vsel %vm524_vm13, %v531_v38, %v530_v17  ;;  %v601_v44 = vrot.slane %v1444_v3, 7  ;;  %v602_v63 = vrot.slane %v1448_v4, 6  ;;  %v604_v30 = vrot.slane %v371_v37, 5 }
  0xf4   : > { %v557_v8 = vsel %vm547_vm14, %v1962_v47, %v555_v15  ;;  %v534_v20 = vsel %vm527_vm15, %v533_v26, %v532_v22  ;;  %v580_v41 = vsel %vm521_vm12, %v579_v48, %v578_v33  ;;  %v606_v12 = vrot.slane %v373_v50, 4 }
  0xf5   : > { %v559_v35 = vsel %vm550_vm0, %v558_v46, %v557_v8  ;;  %v581_v60 = vsel %vm524_vm13, %v339_v34, %v580_v41  ;;  %v603_v38 = vsel %vm547_vm14, %v602_v63, %v601_v44  ;;  %v1963_v26 = vrot.slane %v1368_v18, 2 }
  0xf6   : > { %v561_v31 = vsel %vm553_vm1, %v560_v39, %v559_v35  ;;  %v583_v47 = vsel %vm527_vm15, %v582_v5, %v581_v60  ;;  %v605_v3 = vsel %vm550_vm0, %v604_v30, %v603_v38  ;;  %v1964_v39 = vrot.slane %v1368_v18, 3 }
  0xf7   : > { %v701_v4 = vsel %vm699_vm2, %v534_v20, %v561_v31  ;;  %v274_v46 = vsel %vm235_vm3, %v1963_v26, 0.0  ;;  %v607_v33 = vsel %vm553_vm1, %v606_v12, %v605_v3  ;;  %v1965_v25 = vrot.slane %v1424_v51, 1 }
  0xf8   : > { %v276_v34 = vsel %vm235_vm3, %v1964_v39, 0.0  ;;  %v1966_v37 = vrot.slane %v1424_v51, 2  ;;  %v703_v0 = vsel %vm699_vm2, %v583_v47, %v607_v33  ;;  %v338_v9 = vsel %vm235_vm3, %v1364_v16, 0.0 }
  0xf9   : > { %v306_v5 = vsel %vm235_vm3, %v1965_v25, 0.0  ;;  %v1967_v18 = vrot.slane %v1364_v16, 1  ;;  %v1968_v17 = vrot.slane %v1418_v49, 7  ;;  %v910_v51 = vpack.c.bf16 %v703_v0, %v701_v4 }
  0xfa   : > { %v308_v50 = vsel %vm235_vm3, %v1966_v37, 0.0  ;;  %v372_v22 = vsel %vm235_vm3, %v1418_v49, 0.0  ;;  %v1969_v8 = vrot.slane %v1401_v36, 7  ;;  %v523_v63 = vrot.slane %v274_v46, 6 }
  0xfb   : > { %v340_v15 = vsel %vm235_vm3, %v1967_v18, 0.0  ;;  %v370_v48 = vsel %vm235_vm3, %v1968_v17, 0.0  ;;  %v526_v16 = vrot.slane %v276_v34, 5  ;;  %v1970_v20 = vrot.slane %v1457_v10, 5  ;;  %911 = vmatprep.subr.bf16.mxu0 %v910_v51 }
  0xfc   : > { %v522_v44 = vsel %vm521_vm12, %v1969_v8, %v1407_v43  ;;  %v1971_v35 = vrot.slane %v1462_v11, 4  ;;  %v549_v30 = vrot.slane %v306_v5, 3  ;;  %v552_v31 = vrot.slane %v308_v50, 2 }
  0xfd   : > { %v525_v60 = vsel %vm524_vm13, %v523_v63, %v522_v44  ;;  %v1972_v49 = vrot.slane %v1380_v27, 2  ;;  %v1973_v38 = vrot.slane %v1384_v28, 1  ;;  %v576_v43 = vrot.slane %v340_v15, 7 }
  0xfe   : > { %v548_v41 = vsel %vm547_vm14, %v1971_v35, %v1970_v20  ;;  %v1974_v12 = vrot.slane %v1434_v61, 7  ;;  %v1975_v10 = vrot.slane %v1438_v62, 6  ;;  %v695_v47 = vrot.slane %v1642_v45, 6 }
  0xff   : > { %v574_v36 = vsel %vm521_vm12, %v1973_v38, %v1972_v49  ;;  %v551_v3 = vsel %vm550_vm0, %v549_v30, %v548_v41  ;;  %v597_v26 = vrot.slane %v370_v48, 5  ;;  %v528_v27 = vsel %vm527_vm15, %v526_v16, %v525_v60 }
 0x100   : > { %v596_v11 = vsel %vm547_vm14, %v1975_v10, %v1974_v12  ;;  %v575_v4 = vsel %vm524_vm13, %v338_v9, %v574_v36  ;;  %v554_v28 = vsel %vm553_vm1, %v552_v31, %v551_v3  ;;  %v599_v46 = vrot.slane %v372_v22, 4  ;;  %v1995_v10 = vld [vmem:[#allocation16_spill] sm:$0xff]  ;;  %v1997_v3 = vld [vmem:[#allocation17_spill] sm:$0xff] }
 0x101   : > { %v1976_v33 = vrot.slane %v1477_v21, 6  ;;  %v577_v62 = vsel %vm527_vm15, %v576_v43, %v575_v4  ;;  %v598_v39 = vsel %vm550_vm0, %v597_v26, %v596_v11  ;;  %v700_v45 = vsel %vm699_vm2, %v528_v27, %v554_v28  ;;  %v1993_v43 = vld [vmem:[#allocation13_spill] sm:$0xff]  ;;  %v1999_v26 = vld [vmem:[#allocation15_spill] sm:$0xff]  ;;  %v2002_v28 = vld [vmem:[#allocation14_spill] sm:$0xff] }
 0x102   : > { %v1977_v34 = vrot.slane %v1521_v23, 5  ;;  %v600_v5 = vsel %vm553_vm1, %v599_v46, %v598_v39  ;;  %v1978_v37 = vrot.slane %v1496_v52, 1  ;;  %v1979_v0 = vrot.slane %v1539_v59, 6 }
 0x103   : > { %v407_v61 = vsel %vm236_vm4, %v1976_v33, 0.0  ;;  %v1980_v9 = vrot.slane %v1547_v40, 5  ;;  %v702_v15 = vsel %vm699_vm2, %v577_v62, %v600_v5  ;;  %v1981_v23 = vrot.slane %v1512_v56, 7 }
 0x104   : > { %v441_v25 = vsel %vm236_vm4, %v1977_v34, 0.0  ;;  %v626_v21 = vsel %vm547_vm14, %v1508_v55, %v1978_v37  ;;  %v629_v50 = vrot.slane %v407_v61, 6  ;;  %v1982_v48 = vrot.slane %v1560_v57, 4  ;;  %v2004_v61 = vld [vmem:[#allocation18_spill] sm:$0xff]  ;;  %v2007_v34 = vld [vmem:[#allocation21_spill] sm:$0xff]  ;;  %v2009_v37 = vld [vmem:[#allocation23_spill] sm:$0xff] }
 0x105   : > { %v650_v18 = vsel %vm521_vm12, %v1980_v9, %v1979_v0  ;;  %v628_v17 = vsel %vm550_vm0, %v1981_v23, %v626_v21  ;;  %v653_v51 = vrot.slane %v441_v25, 3  ;;  %v912_v22 = vpack.c.bf16 %v702_v15, %v700_v45  ;;  %v2006_v45 = vld [vmem:[#allocation22_spill] sm:$0xff]  ;;  %v2010_v9 = vld [vmem:[#allocation24_spill] sm:$0xff] }
 0x106   : > { %v652_v52 = vsel %vm524_vm13, %v1982_v48, %v650_v18  ;;  %v630_v55 = vsel %vm553_vm1, %v629_v50, %v628_v17  ;;  %v1983_v59 = vrot.slane %v1595_v7, 3  ;;  %v1984_v40 = vrot.slane %v1599_v2, 2  ;;  %v2012_v48 = vld [vmem:[#allocation19_spill] sm:$0xff] }
 0x107   : > { %v1985_v44 = vrot.slane %v1470_v19, 6  ;;  %v1986_v63 = vrot.slane %v1571_v24, 4  ;;  %v654_v16 = vsel %vm527_vm15, %v653_v51, %v652_v52  ;;  %v1987_v20 = vrot.slane %v1607_v6, 1  ;;  %913 = vmatpush1.bf16.msra.mxu0 %v912_v22  ;;  %v2013_v52 = vld [vmem:[#allocation20_spill] sm:$0xff] }
 0x108   : > { %v673_v8 = vsel %vm547_vm14, %v1984_v40, %v1983_v59  ;;  %v1988_v2 = vrot.slane %v1518_v29, 5  ;;  %v705_v24 = vsel %vm699_vm2, %v1347_v1, %v630_v55  ;;  %v1989_v14 = vrot.slane %v1490_v42, 1 }
 0x109   : > { %v406_v56 = vsel %vm235_vm3, %v1985_v44, 0.0  ;;  %v475_v57 = vsel %vm236_vm4, %v1986_v63, 0.0  ;;  %v675_v7 = vsel %vm550_vm0, %v1987_v20, %v673_v8  ;;  %v1990_v31 = vrot.slane %v1500_v53, 7  ;;  %v229_v44 = vld [vmem:[%s1917_s1] sm:$0xff] }
 0x10a   : > { %v440_v35 = vsel %vm235_vm3, %v1988_v2, 0.0  ;;  %v676_v19 = vsel %vm553_vm1, %v475_v57, %v675_v7  ;;  %v620_v41 = vsel %vm547_vm14, %v1504_v54, %v1989_v14  ;;  %v623_v30 = vrot.slane %v406_v56, 6  ;;  %v711_v56 = vpop.permute.xlu1 %710 }
 0x10b   : > { %v707_v6 = vsel %vm699_vm2, %v654_v16, %v676_v19  ;;  %v622_v29 = vsel %vm550_vm0, %v1990_v31, %v620_v41  ;;  %v1991_v60 = vrot.slane %v1535_v58, 6  ;;  %v1992_v49 = vrot.slane %v1543_v32, 5 }
 0x10c   : > { %v646_v36 = vrot.slane %v440_v35, 3  ;;  %v914_v1 = vpack.c.bf16 %v707_v6, %v705_v24  ;;  %v624_v42 = vsel %vm553_vm1, %v623_v30, %v622_v29  ;;  %v1994_v12 = vrot.slane %v1993_v43, 4 }
 0x10d   : > { %v643_v38 = vsel %vm521_vm12, %v1992_v49, %v1991_v60  ;;  %v1996_v11 = vrot.slane %v1995_v10, 3  ;;  %v1998_v53 = vrot.slane %v1997_v3, 2  ;;  %v2000_v58 = vrot.slane %v1999_v26, 3 }
 0x10e   : > { %v645_v54 = vsel %vm524_vm13, %v1994_v12, %v643_v38  ;;  %v2003_v46 = vrot.slane %v2002_v28, 4  ;;  %v2005_v62 = vrot.slane %v2004_v61, 1  ;;  %v2008_v25 = vrot.slane %v2007_v34, 7  ;;  %915 = vmatprep.subr.bf16.mxu0 %v914_v1 }
 0x10f   : > { %v667_v4 = vsel %vm547_vm14, %v1998_v53, %v1996_v11  ;;  %v510_v32 = vsel %vm237_vm10, %v2000_v58, 0.0  ;;  %v689_v21 = vrot.slane %v2009_v37, 6  ;;  %v647_v50 = vsel %vm527_vm15, %v646_v36, %v645_v54 }
 0x110   : > { %v474_v33 = vsel %vm235_vm3, %v2003_v46, 0.0  ;;  %v669_v39 = vsel %vm550_vm0, %v2005_v62, %v667_v4  ;;  %v694_v5 = vsel %vm521_vm12, %v2008_v25, %v2006_v45  ;;  %v697_v18 = vrot.slane %v2010_v9, 5 }
 0x111   : > { %v670_v0 = vsel %vm553_vm1, %v474_v33, %v669_v39  ;;  %v704_v15 = vsel %vm699_vm2, %v2011_v13, %v624_v42  ;;  %v696_v17 = vsel %vm524_vm13, %v695_v47, %v694_v5  ;;  %v2014_v51 = vrot.slane %v2013_v52, 7 }
 0x112   : > { %v706_v23 = vsel %vm699_vm2, %v647_v50, %v670_v0  ;;  %v691_v59 = vrot.slane %v510_v32, 5  ;;  %v698_v40 = vsel %vm527_vm15, %v697_v18, %v696_v17  ;;  %vm713_vm3 = vcmask 293888  }
 0x113   : > { %v688_v22 = vsel %vm521_vm12, %v2014_v51, %v2012_v48  ;;  %v916_v55 = vpack.c.bf16 %v706_v23, %v704_v15 }
 0x114   : > { %v690_v8 = vsel %vm524_vm13, %v689_v21, %v688_v22 }
 0x115   : > { %917 = vmatpush1.bf16.msra.mxu0 %v916_v55  ;;  %v692_v47 = vsel %vm527_vm15, %v691_v59, %v690_v8 }
 0x116   : > { %900 = vmatprep.subr.msk.mxu0 %vm699_vm2, %v698_v40 }
 0x119   : > { %901 = vmatpush1.msk.msra.mxu0 %vm699_vm2, %v692_v47 }
 0x11a   : > { %902 = vmatmul.mubr.msk.f32.vlgmr.msra.gmra.mrb[0].mxu0 %vm713_vm3, %v229_v44 }
 0x1ed   : > { %v787_v63 = vpop.f32.mrb[0].mxu0 }
 0x1ee   : > { %v788_v57 = vadd.f32 %v787_v63, %v711_v56  ;;  %v789_v16 = vpop.f32.mrb[1].mxu0 }
 0x1ef   : > { %v790_v20 = vadd.f32 %v789_v16, %v711_v56 }
 0x1f0   : > { %792 = vst [vmem:[%s228_s12] sm:$0xff] %v788_v57 }
 0x1f1   : > { %793 = vst [vmem:[%s228_s12 + $0x8] sm:$0xff] %v790_v20 }
 0x1f2   : > { %1096 = shalt.err (!%p1093_p7)
}
 0x1f3   : > { %s1097_s25 = scalar_lea.hbm %s1872_s21, 256  ;;  %s1101_s5 = scalar_lea.hbm %s1920_s4, 512 }
 0x1f4   : > { %p1098_p9 = scmp.ne.s32.totalorder %s1872_s21, %s1097_s25  ;;  %p1102_p0 = scmp.lt.u32.totalorder %s1872_s21, %s1920_s4 }
 0x1f5   : > { %p1103_p1 = scmp.lt.u32.totalorder %s1101_s5, %s1097_s25  ;;  %p1105_p4 = scmp.lt.u32.totalorder %s1097_s25, %s1872_s21 }
 0x1f6   : > { %p1099_p2 = pnand %p1098_p9, %p1286_p12 }
 0x1f7   : > { %p1104_p11 = por %p1103_p1, %p1102_p0 }
 0x1f8   : > { %p1100_p5 = pneg %p1099_p2 }
 0x1f9   : > { %p1106_p6 = por %p1105_p4, %p1104_p11 }
 0x1fb   : > { %p1107_p8 = pnand %p1106_p6, %p1100_p5 }
 0x1fd   : > { %1110 = shalt.err (!%p1107_p8)
}
 0x1fe   : > { %924 = dma.vmem_to_hbm [thread:$0]  (%p1286_p12), %s1874_s13, 256, %s1872_s21, %s795_s28  }
 0x1ff PF: > { %s821_s8 = sand.u32 1, %s1141_s15   ;;  %p2015_p10 = scmp.ne.s32.totalorder %s1935_s22, 0 }
 0x200   : > { %p2016_p13 = scmp.ge.s32.totalorder %s1153_s18, 2  ;;  %s822_s11 = scalar_lea.sflag [#allocation4], %s821_s8 }
 0x202   : > { %p935_p3 = pnand %p2016_p13, %p2015_p10 }
 0x204   : > { %1136 = dma.done.wait (!%p935_p3), %s822_s11, 256  }
 0x205   : > { %1138 = vsyncadd (!%p935_p3), %s822_s11, 4294967040  ;;  %p18_p7 = scmp.ge.s32.totalorder %s1251_s27, 4   ;;  %s2017_s15 = smov %s1145_s16 }
 0x206   : > { %s2018_s16 = smov %s1149_s17  ;;  %s2019_s17 = smov %s1282_s24 }
 0x207   : > { %s2020_s18 = smov %s1251_s27  ;;  %20 = sbr.rel (!%p18_p7) target bundleno = 6 (0x6), region = 85 }
 0x20e   :  { %827 = vsyncpa [#allocation3], 1 }
 0x20f   :  { %829 = vsyncpa [#allocation3 + $0x1], 1 }
 0x210   :  { %830 = vsyncpa [#allocation6], 1 }
 0x211   :  { %831 = vsyncpa [#allocation4], 1 }
 0x212   :  { %833 = vsyncpa [#allocation4 + $0x1], 1 }

</bundles_post_ra>
